<compile_context>
chip_gen: v5e
topology: v5e:2x2
jax: 0.10.0
libtpu: 0.0.40
codegen_flags: <defaults>
</compile_context>

<pallas_src>
import functools

import jax
import jax.numpy as jnp
from jax.experimental import pallas as pl
from jax.experimental.pallas import tpu as pltpu


def _cconvt_gemm_kernel(cols_ref, w_ref, b_ref, out_ref):
    """Per-batch GEMM.

    cols_ref: (1, K, HW)       im2col columns for this batch element
    w_ref:    (2*C_out, K)     block-complex packed weights (resident)
    b_ref:    (2*C_out, 1)     combined bias (resident)
    out_ref:  (1, 2*C_out, HW) lane-dense output
    """
    acc = jnp.dot(w_ref[...], cols_ref[0],
                  preferred_element_type=jnp.float32)
    out_ref[0] = (acc + b_ref[...]).astype(out_ref.dtype)


@functools.partial(jax.jit, static_argnames=("stride", "padding"))
def complex_conv_transpose2d(x, w_r, w_i, b_r, b_i, *, stride, padding):
    """x: (N, C_in, H, W, 2) float32.  Returns (N, C_out, H_out, W_out, 2)."""
    N, C_in, H, W, _ = x.shape
    C_out = w_r.shape[1]
    kh, kw = w_r.shape[2], w_r.shape[3]
    s, p = stride, padding
    H_out = (H - 1) * s - 2 * p + kh
    W_out = (W - 1) * s - 2 * p + kw
    pad_h, pad_w = kh - 1 - p, kw - 1 - p
    assert pad_h >= 0 and pad_w >= 0, \
        "padding > kernel_size - 1 not supported in this kernel"

    # ---- activations: pack complex channels, dilate by stride, pad ---------
    xc = jnp.concatenate([x[..., 0], x[..., 1]], axis=1)        # (N, 2Ci, H, W)
    Hd, Wd = (H - 1) * s + 1, (W - 1) * s + 1
    xd = jnp.zeros((N, 2 * C_in, Hd, Wd), xc.dtype).at[:, :, ::s, ::s].set(xc)
    xdp = jnp.pad(xd, ((0, 0), (0, 0), (pad_h, pad_h), (pad_w, pad_w)))

    # ---- im2col: (N, 2*C_in*kh*kw, H_out*W_out) -----------------------------
    K = 2 * C_in * kh * kw
    HW = H_out * W_out
    slices = [xdp[:, :, dy:dy + H_out, dx:dx + W_out]
              for dy in range(kh) for dx in range(kw)]
    cols = (jnp.stack(slices, axis=2)                           # (N,2Ci,kh*kw,Ho,Wo)
            .reshape(N, K, HW).astype(jnp.float32))

    # ---- weights: equivalent forward-conv, block-complex, GEMM-packed -------
    Ar = jnp.transpose(jnp.flip(w_r, (2, 3)), (2, 3, 1, 0))     # (kh,kw,Co,Ci)
    Ai = jnp.transpose(jnp.flip(w_i, (2, 3)), (2, 3, 1, 0))
    w_blk = jnp.concatenate(
        [jnp.concatenate([Ar, -Ai], axis=-1),
         jnp.concatenate([Ai, Ar], axis=-1)], axis=-2)          # (kh,kw,2Co,2Ci)
    # row index of the GEMM contraction = ci*(kh*kw) + dy*kw + dx  (matches cols)
    w_mat = (jnp.transpose(w_blk, (2, 3, 0, 1))
             .reshape(2 * C_out, K).astype(jnp.float32))

    # ---- bias: real -> b_r - b_i, imag -> b_r + b_i -------------------------
    bias2 = (jnp.concatenate([b_r - b_i, b_r + b_i])
             .reshape(2 * C_out, 1).astype(jnp.float32))

    out_flat = pl.pallas_call(
        _cconvt_gemm_kernel,
        out_shape=jax.ShapeDtypeStruct((N, 2 * C_out, HW), jnp.float32),
        grid_spec=pltpu.PrefetchScalarGridSpec(
            num_scalar_prefetch=0,
            grid=(N,),
            in_specs=[
                pl.BlockSpec((1, K, HW), lambda n: (n, 0, 0)),
                # constant block index -> weights/bias resident across the grid
                pl.BlockSpec((2 * C_out, K), lambda n: (0, 0)),
                pl.BlockSpec((2 * C_out, 1), lambda n: (0, 0)),
            ],
            out_specs=pl.BlockSpec((1, 2 * C_out, HW), lambda n: (n, 0, 0)),
        ),
        compiler_params=pltpu.CompilerParams(
            dimension_semantics=("parallel",)),
    )(cols, w_mat, bias2)

    # ---- unpack: (N, 2*C_out, HW) -> (N, C_out, H_out, W_out, 2) ------------
    out = out_flat.reshape(N, 2 * C_out, H_out, W_out)
    return jnp.stack([out[:, :C_out], out[:, C_out:]], axis=-1)


def _ref_tconv(x_nchw, w, b, stride, padding):
    """Plain-JAX reference for a single real ConvTranspose2d (NCHW)."""
    k = w.shape[2]
    w_t = jnp.transpose(jnp.flip(w, (2, 3)), (1, 0, 2, 3))  # (C_out, C_in, kh, kw)
    y = jax.lax.conv_general_dilated(
        x_nchw, w_t, window_strides=(1, 1),
        padding=[(k - 1 - padding, k - 1 - padding)] * 2,
        lhs_dilation=(stride, stride),
        dimension_numbers=("NCHW", "OIHW", "NCHW"))
    return y + b[None, :, None, None]


if __name__ == "__main__":
    # ComplexConvTranspose2d(input_channels=4, num_channels=4, kernel_size=3,
    #                        padding=1, stride=2)
    N, C_in, C_out, H, W = 2, 4, 4, 8, 8
    K, PAD, STRIDE = 3, 1, 2

    key = jax.random.PRNGKey(0)
    kx, kwr, kwi, kbr, kbi = jax.random.split(key, 5)

    x = jax.random.normal(kx, (N, C_in, H, W, 2), dtype=jnp.float32)
    # nn.ConvTranspose2d weight shape: (in_channels, out_channels, kh, kw)
    w_r = jax.random.normal(kwr, (C_in, C_out, K, K), dtype=jnp.float32) * 0.1
    w_i = jax.random.normal(kwi, (C_in, C_out, K, K), dtype=jnp.float32) * 0.1
    b_r = jax.random.normal(kbr, (C_out,), dtype=jnp.float32) * 0.1
    b_i = jax.random.normal(kbi, (C_out,), dtype=jnp.float32) * 0.1

    out = complex_conv_transpose2d(x, w_r, w_i, b_r, b_i,
                                   stride=STRIDE, padding=PAD)
    out = jax.block_until_ready(out)

    # cross-check against XLA's dilated conv (same math as PyTorch ConvTranspose2d)
    x_r, x_i = x[..., 0], x[..., 1]
    ref_real = (_ref_tconv(x_r, w_r, b_r, STRIDE, PAD)
                - _ref_tconv(x_i, w_i, b_i, STRIDE, PAD))
    ref_imag = (_ref_tconv(x_i, w_r, b_r, STRIDE, PAD)
                + _ref_tconv(x_r, w_i, b_i, STRIDE, PAD))
    ref = jnp.stack([ref_real, ref_imag], axis=-1)

    H_OUT = (H - 1) * STRIDE - 2 * PAD + K
    W_OUT = (W - 1) * STRIDE - 2 * PAD + K
    assert out.shape == (N, C_out, H_OUT, W_OUT, 2), out.shape
    assert jnp.allclose(out, ref, atol=1e-4, rtol=1e-4), \
        float(jnp.max(jnp.abs(out - ref)))

    print("KERNEL_OK")
</pallas_src>

<mosaic_0001>
module attributes {stable_mosaic.version = 11 : i64} {
  func.func @_cconvt_gemm_kernel(%arg0: i32, %arg1: memref<1x72x225xf32, #tpu.memory_space<vmem>>, %arg2: memref<8x72xf32, #tpu.memory_space<vmem>>, %arg3: memref<8x1xf32, #tpu.memory_space<vmem>>, %arg4: memref<1x8x225xf32, #tpu.memory_space<vmem>>) attributes {dimension_semantics = [#tpu.dimension_semantics<parallel>], iteration_bounds = array<i64: 2>, scalar_prefetch = 0 : i64, scratch_operands = 0 : i64, tpu.core_type = #tpu.core_type<tc>, window_params = [{transform_indices = @transform_0, window_bounds = array<i64: 1, 72, 225>}, {pipeline_mode = #tpu.pipeline_mode<synchronous>, transform_indices = @transform_1, window_bounds = array<i64: 8, 72>}, {pipeline_mode = #tpu.pipeline_mode<synchronous>, transform_indices = @transform_2, window_bounds = array<i64: 8, 1>}, {transform_indices = @transform_3, window_bounds = array<i64: 1, 8, 225>}]} {
    %c0 = arith.constant 0 : index
    %c0_0 = arith.constant 0 : index
    %0 = vector.load %arg2[%c0, %c0_0] : memref<8x72xf32, #tpu.memory_space<vmem>>, vector<8x72xf32>
    %c0_1 = arith.constant 0 : index
    %c0_2 = arith.constant 0 : index
    %c0_3 = arith.constant 0 : index
    %1 = vector.load %arg1[%c0_1, %c0_2, %c0_3] : memref<1x72x225xf32, #tpu.memory_space<vmem>>, vector<1x72x225xf32>
    %2 = vector.shape_cast %1 : vector<1x72x225xf32> to vector<72x225xf32>
    %cst = arith.constant dense<0.000000e+00> : vector<8x225xf32>
    %3 = tpu.matmul %0, %2, %cst {dimension_numbers = #tpu.dot_dimension_numbers<[1], [0], [0], [1], [0, 0, 1, 1], [], []>} : vector<8x72xf32>, vector<72x225xf32>, vector<8x225xf32> -> vector<8x225xf32>
    %c0_4 = arith.constant 0 : index
    %c0_5 = arith.constant 0 : index
    %4 = vector.load %arg3[%c0_4, %c0_5] : memref<8x1xf32, #tpu.memory_space<vmem>>, vector<8x1xf32>
    %5 = vector.broadcast %4 : vector<8x1xf32> to vector<8x225xf32>
    %6 = arith.addf %3, %5 : vector<8x225xf32>
    %c0_6 = arith.constant 0 : index
    %c0_7 = arith.constant 0 : index
    %c0_8 = arith.constant 0 : index
    %7 = vector.load %arg4[%c0_6, %c0_7, %c0_8] : memref<1x8x225xf32, #tpu.memory_space<vmem>>, vector<1x8x225xf32>
    %8 = vector.shape_cast %7 : vector<1x8x225xf32> to vector<8x225xf32>
    %9 = vector.shape_cast %6 : vector<8x225xf32> to vector<1x8x225xf32>
    tpu.vector_store %arg4[%c0_6, %c0_7, %c0_8], %9 {strides = array<i32>} : memref<1x8x225xf32, #tpu.memory_space<vmem>>, vector<1x8x225xf32>,
    return
  }
  func.func @transform_0(%arg0: i32) -> (i32, i32, i32) {
    %c0_i32 = arith.constant 0 : i32
    %c0_i32_0 = arith.constant 0 : i32
    %c0_i32_1 = arith.constant 0 : i32
    return %arg0, %c0_i32, %c0_i32_0 : i32, i32, i32
  }
  func.func @transform_1(%arg0: i32) -> (i32, i32) {
    %c0_i32 = arith.constant 0 : i32
    %c0_i32_0 = arith.constant 0 : i32
    %c0_i32_1 = arith.constant 0 : i32
    return %c0_i32, %c0_i32_0 : i32, i32
  }
  func.func @transform_2(%arg0: i32) -> (i32, i32) {
    %c0_i32 = arith.constant 0 : i32
    %c0_i32_0 = arith.constant 0 : i32
    %c0_i32_1 = arith.constant 0 : i32
    return %c0_i32, %c0_i32_0 : i32, i32
  }
  func.func @transform_3(%arg0: i32) -> (i32, i32, i32) {
    %c0_i32 = arith.constant 0 : i32
    %c0_i32_0 = arith.constant 0 : i32
    %c0_i32_1 = arith.constant 0 : i32
    return %arg0, %c0_i32, %c0_i32_0 : i32, i32, i32
  }
}

</mosaic_0001>

<bundles_post_ra>
// kernel: complex_conv_transpose2d.1
= control target key start
LH: loop header
LB: loop body
LE: loop exit
PB: predicated region body
PF: predicated region fallthrough
CT: control target
= control target key end

     0   :  { %s351_s12 = smov 0   ;;  %s398_s0 = inlined_call_operand.vmem [shape: f32[2,72,225], index: 0, kind: input, shape index: {}]   ;;  %s399_s1 = inlined_call_operand.vmem [shape: f32[8,72], index: 1, kind: input, shape index: {}]   ;;  %s400_s2 = inlined_call_operand.vmem [shape: f32[8,1], index: 2, kind: input, shape index: {}]   ;;  %s401_s3 = inlined_call_operand.vmem [shape: f32[2,8,225], index: 3, kind: output, shape index: {}]  }
   0x1 LB: > { %s298_s13 = sadd.s32 4294967295, %s328_s12   ;;  %p302_p0 = scmp.ge.s32.totalorder %s328_s12, 1  ;;  %s328_s12 = sphi %s351_s12, %s13_s12  }
   0x2   : > { %p137_p1 = scmp.lt.s32.totalorder %s328_s12, 3 }
   0x4   : > { %p138_p2 = pnand %p302_p0, %p137_p1 }
   0x5   : > { %p161_p3 = scmp.lt.s32.totalorder (!%p138_p2), %s298_s13, 1 }
   0x6   : > { %141 = sbr.rel (%p138_p2) target bundleno = 163 (0xa3), region = 32 }
   0xb   : > { %v190_v0 = vld [vmem:[%s400_s2] sm:$0xff]  ;;  %v330_v1 = vmov 0   ;;  %s403_s13 = smov (!%p161_p3, %s298_s13), 1  ;;  %vm196_vm0 = vcmask 588800   ;;  %vm241_vm1 = vcmask 793600  }
   0xc   : > { %321 = vset.pattern.permute.xlu0 %v330_v1  ;;  %s311_s16 = smul.u32 144, %s403_s13  ;;  %v171_v20 = vld [vmem:[%s399_s1] sm:$0xff]  ;;  %s310_s22 = sshll.u32 %s403_s13, 4 }
   0xd   : > { %193 = vperm.xlu0 %321, %v190_v0   ;;  %s170_s25 = scalar_lea.vmem %s401_s3, %s310_s22 }
   0xe   : > { %s368_s19 = scalar_lea.vmem %s398_s0, %s311_s16 }
   0xf   : > { %v188_v2 = vld [vmem:[%s368_s19 + $0x80] sm:$0xff]  ;;  %v189_v3 = vld [vmem:[%s368_s19 + $0x88] sm:$0xff]  ;;  %v186_v4 = vld [vmem:[%s368_s19 + $0x70] sm:$0xff] }
  0x10   : > { %207 = vmatpush.msra.mxu0 %v188_v2  ;;  %227 = vmatpush.msra.mxu1 %v189_v3  ;;  %v187_v5 = vld [vmem:[%s368_s19 + $0x78] sm:$0xff]  ;;  %v184_v6 = vld [vmem:[%s368_s19 + $0x60] sm:$0xff]  ;;  %v185_v7 = vld [vmem:[%s368_s19 + $0x68] sm:$0xff] }
  0x11   : > { %v182_v8 = vld [vmem:[%s368_s19 + $0x50] sm:$0xff]  ;;  %v183_v9 = vld [vmem:[%s368_s19 + $0x58] sm:$0xff]  ;;  %v180_v10 = vld [vmem:[%s368_s19 + $0x40] sm:$0xff] }
  0x12   : > { %208 = vmatpush.msra.mxu0 %v186_v4  ;;  %228 = vmatpush.msra.mxu1 %v187_v5  ;;  %v181_v11 = vld [vmem:[%s368_s19 + $0x48] sm:$0xff]  ;;  %v178_v12 = vld [vmem:[%s368_s19 + $0x30] sm:$0xff]  ;;  %v179_v13 = vld [vmem:[%s368_s19 + $0x38] sm:$0xff] }
  0x13   : > { %v176_v14 = vld [vmem:[%s368_s19 + $0x20] sm:$0xff]  ;;  %v177_v15 = vld [vmem:[%s368_s19 + $0x28] sm:$0xff]  ;;  %v174_v16 = vld [vmem:[%s368_s19 + $0x10] sm:$0xff] }
  0x14   : > { %209 = vmatpush.msra.mxu0 %v184_v6  ;;  %229 = vmatpush.msra.mxu1 %v185_v7  ;;  %v175_v17 = vld [vmem:[%s368_s19 + $0x18] sm:$0xff]  ;;  %v172_v18 = vld [vmem:[%s368_s19] sm:$0xff]  ;;  %v173_v19 = vld [vmem:[%s368_s19 + $0x8] sm:$0xff] }
  0x16   : > { %210 = vmatpush.msra.mxu0 %v182_v8  ;;  %230 = vmatpush.msra.mxu1 %v183_v9 }
  0x18   : > { %211 = vmatpush.msra.mxu0 %v180_v10  ;;  %231 = vmatpush.msra.mxu1 %v181_v11 }
  0x1a   : > { %212 = vmatpush.msra.mxu0 %v178_v12  ;;  %232 = vmatpush.msra.mxu1 %v179_v13 }
  0x1c   : > { %213 = vmatpush.msra.mxu0 %v176_v14  ;;  %233 = vmatpush.msra.mxu1 %v177_v15 }
  0x1e   : > { %214 = vmatpush.msra.mxu0 %v174_v16  ;;  %234 = vmatpush.msra.mxu1 %v175_v17 }
  0x20   : > { %215 = vmatpush.msra.mxu0 %v172_v18  ;;  %235 = vmatpush.msra.mxu1 %v173_v19 }
  0x21   : > { %306 = vmatmul.msk.f32.vlgmr.msra.gmra.mxu0 %vm196_vm0, %v171_v20  ;;  %307 = vmatmul.msk.f32.vlgmr.msra.gmra.mxu1 %vm196_vm0, %v171_v20 }
  0x7f   : > { %v194_v21 = vpop.permute.xlu0 %193 }
  0x9e   : > { %v217_v22 = vpop.f32.mrf.mxu0  ;;  %v237_v23 = vpop.f32.mrf.mxu1 }
  0x9f   : > { %v218_v24 = vadd.f32 %v217_v22, %v194_v21  ;;  %v238_v25 = vadd.f32 %v237_v23, %v194_v21 }
  0xa1   : > { %240 = vst [vmem:[%s170_s25] sm:$0xff] %v218_v24 }
  0xa2   : > { %242 = vst.msk [vmem:[%s170_s25 + $0x8] sm:$0xff] %vm241_vm1, %v238_v25 }
  0xa3 PF: > { %s13_s12 = sadd.s32 1, %s328_s12  }
  0xa4   : > { %p10_p4 = scmp.ge.s32.totalorder %s13_s12, 4  }
  0xa6   :  { %12 = sbr.rel (!%p10_p4) target bundleno = 1 (0x1), region = 62 }

</bundles_post_ra>
